<compile_context>
chip_gen: v6e
topology: v6e:2x2x1
jax: 0.10.0
libtpu: 0.0.40
codegen_flags: <defaults>
</compile_context>

<pallas_src>
import jax
import jax.numpy as jnp
from jax.experimental import pallas as pl
from jax.experimental.pallas import tpu as pltpu


def _normalize_kernel(mean_ref, inv_std_ref, x_ref, o_ref):
    # mean_ref / inv_std_ref: VMEM (1, C, 1); x_ref / o_ref: VMEM (bn, C, HW).
    # Broadcasting the (1, C, 1) stats across batch rows and lanes is free
    # VPU replication.
    o_ref[...] = (x_ref[...] - mean_ref[...]) * inv_std_ref[...]


def _pick_batch_block(n, row_bytes, target_bytes=4 * 1024 * 1024):
    """Pick bn so one block is ~target_bytes, bn divides N, and (when N > 1)
    there are at least 2 grid steps so both v7x TensorCores get work."""
    bn = max(1, min(n, target_bytes // max(row_bytes, 1)))
    # Avoid partial leading blocks: make bn divide N.
    while n % bn != 0:
        bn -= 1
    # Keep >= 2 grid steps when possible (megacore on v7x).
    if n // bn < 2 and n > 1:
        bn = n // 2
        while n % bn != 0:
            bn -= 1
    return max(bn, 1)


def normalize_input(x, mean, std):
    """(x - mean[None, :, None, None]) / std[None, :, None, None] for NCHW x."""
    N, C, H, W = x.shape
    assert mean.shape == (C,) and std.shape == (C,)
    HW = H * W

    # Lane-dense slab: last dim = H*W (multiple of 128 for typical CIFAR-ish
    # spatial sizes); second-to-last dim = full C extent.
    x2 = x.reshape(N, C, HW)
    mean3 = mean.astype(x.dtype).reshape(1, C, 1)
    inv_std3 = (1.0 / std).astype(x.dtype).reshape(1, C, 1)

    row_bytes = C * HW * x.dtype.itemsize
    bn = _pick_batch_block(N, row_bytes)
    grid = (N // bn,)

    out2 = pl.pallas_call(
        _normalize_kernel,
        out_shape=jax.ShapeDtypeStruct((N, C, HW), x.dtype),
        grid=grid,
        in_specs=[
            pl.BlockSpec((1, C, 1), lambda i: (0, 0, 0)),    # mean   (VMEM)
            pl.BlockSpec((1, C, 1), lambda i: (0, 0, 0)),    # inv_std(VMEM)
            pl.BlockSpec((bn, C, HW), lambda i: (i, 0, 0)),  # x block
        ],
        out_specs=pl.BlockSpec((bn, C, HW), lambda i: (i, 0, 0)),
        compiler_params=pltpu.CompilerParams(
            dimension_semantics=("parallel",),
            # Blocks are capped near ~4 MiB, well under v7x's 32 MiB default
            # scoped VMEM even with double-buffered in/out.
        ),
    )(mean3, inv_std3, x2)

    return out2.reshape(N, C, H, W)


if __name__ == "__main__":
    # Deterministic buffers from the module __init__ (CIFAR-10 mean/std).
    mean = jnp.array([0.4914, 0.4822, 0.4465], dtype=jnp.float32)
    std = jnp.array([0.2023, 0.1994, 0.201], dtype=jnp.float32)

    # Small example input: batch=2, channels=3 (module implies 3), spatial=16.
    key = jax.random.PRNGKey(0)
    x = jax.random.normal(key, (2, 3, 16, 16), dtype=jnp.float32)

    out = normalize_input(x, mean, std)
    out = jax.block_until_ready(out)

    # Reference check against plain-JAX broadcasting semantics.
    ref = (x - mean.reshape(1, -1, 1, 1)) / std.reshape(1, -1, 1, 1)
    assert out.shape == x.shape and out.dtype == x.dtype
    assert jnp.allclose(out, ref, atol=1e-5, rtol=1e-5)

    print("KERNEL_OK")
</pallas_src>

<mosaic_0001>
module attributes {stable_mosaic.version = 11 : i64} {
  func.func @_normalize_kernel(%arg0: i32, %arg1: memref<1x3x1xf32, #tpu.memory_space<vmem>>, %arg2: memref<1x3x1xf32, #tpu.memory_space<vmem>>, %arg3: memref<1x3x256xf32, #tpu.memory_space<vmem>>, %arg4: memref<1x3x256xf32, #tpu.memory_space<vmem>>) attributes {dimension_semantics = [#tpu.dimension_semantics<parallel>], iteration_bounds = array<i64: 2>, scalar_prefetch = 0 : i64, scratch_operands = 0 : i64, tpu.core_type = #tpu.core_type<tc>, window_params = [{pipeline_mode = #tpu.pipeline_mode<synchronous>, transform_indices = @transform_0, window_bounds = array<i64: 1, 3, 1>}, {pipeline_mode = #tpu.pipeline_mode<synchronous>, transform_indices = @transform_1, window_bounds = array<i64: 1, 3, 1>}, {transform_indices = @transform_2, window_bounds = array<i64: 1, 3, 256>}, {transform_indices = @transform_3, window_bounds = array<i64: 1, 3, 256>}]} {
    %c0 = arith.constant 0 : index
    %c0_0 = arith.constant 0 : index
    %c0_1 = arith.constant 0 : index
    %0 = vector.load %arg3[%c0, %c0_0, %c0_1] : memref<1x3x256xf32, #tpu.memory_space<vmem>>, vector<1x3x256xf32>
    %c0_2 = arith.constant 0 : index
    %c0_3 = arith.constant 0 : index
    %c0_4 = arith.constant 0 : index
    %1 = vector.load %arg1[%c0_2, %c0_3, %c0_4] : memref<1x3x1xf32, #tpu.memory_space<vmem>>, vector<1x3x1xf32>
    %2 = vector.broadcast %1 : vector<1x3x1xf32> to vector<1x3x256xf32>
    %3 = arith.subf %0, %2 : vector<1x3x256xf32>
    %c0_5 = arith.constant 0 : index
    %c0_6 = arith.constant 0 : index
    %c0_7 = arith.constant 0 : index
    %4 = vector.load %arg2[%c0_5, %c0_6, %c0_7] : memref<1x3x1xf32, #tpu.memory_space<vmem>>, vector<1x3x1xf32>
    %5 = vector.broadcast %4 : vector<1x3x1xf32> to vector<1x3x256xf32>
    %6 = arith.mulf %3, %5 : vector<1x3x256xf32>
    %c0_8 = arith.constant 0 : index
    %c0_9 = arith.constant 0 : index
    %c0_10 = arith.constant 0 : index
    %7 = vector.load %arg4[%c0_8, %c0_9, %c0_10] : memref<1x3x256xf32, #tpu.memory_space<vmem>>, vector<1x3x256xf32>
    tpu.vector_store %arg4[%c0_8, %c0_9, %c0_10], %6 {strides = array<i32>} : memref<1x3x256xf32, #tpu.memory_space<vmem>>, vector<1x3x256xf32>,
    return
  }
  func.func @transform_0(%arg0: i32) -> (i32, i32, i32) {
    %c0_i32 = arith.constant 0 : i32
    %c0_i32_0 = arith.constant 0 : i32
    %c0_i32_1 = arith.constant 0 : i32
    %c0_i32_2 = arith.constant 0 : i32
    return %c0_i32, %c0_i32_0, %c0_i32_1 : i32, i32, i32
  }
  func.func @transform_1(%arg0: i32) -> (i32, i32, i32) {
    %c0_i32 = arith.constant 0 : i32
    %c0_i32_0 = arith.constant 0 : i32
    %c0_i32_1 = arith.constant 0 : i32
    %c0_i32_2 = arith.constant 0 : i32
    return %c0_i32, %c0_i32_0, %c0_i32_1 : i32, i32, i32
  }
  func.func @transform_2(%arg0: i32) -> (i32, i32, i32) {
    %c0_i32 = arith.constant 0 : i32
    %c0_i32_0 = arith.constant 0 : i32
    %c0_i32_1 = arith.constant 0 : i32
    return %arg0, %c0_i32, %c0_i32_0 : i32, i32, i32
  }
  func.func @transform_3(%arg0: i32) -> (i32, i32, i32) {
    %c0_i32 = arith.constant 0 : i32
    %c0_i32_0 = arith.constant 0 : i32
    %c0_i32_1 = arith.constant 0 : i32
    return %arg0, %c0_i32, %c0_i32_0 : i32, i32, i32
  }
}

</mosaic_0001>

<bundles_post_ra>
// kernel: tpu_custom_call.1
= control target key start
LH: loop header
LB: loop body
LE: loop exit
PB: predicated region body
PF: predicated region fallthrough
CT: control target
= control target key end

     0   :  { %s310_s12 = smov 0   ;;  %s333_s0 = inlined_call_operand.vmem [shape: f32[1,3,1], index: 0, kind: input, shape index: {}]   ;;  %s334_s1 = inlined_call_operand.vmem [shape: f32[1,3,1], index: 1, kind: input, shape index: {}]   ;;  %s335_s2 = inlined_call_operand.vmem [shape: f32[2,3,256], index: 2, kind: input, shape index: {}]   ;;  %s336_s3 = inlined_call_operand.vmem [shape: f32[2,3,256], index: 3, kind: output, shape index: {}]  }
   0x1 LB: > { %s256_s13 = sadd.s32 4294967295, %s286_s12   ;;  %p260_p0 = scmp.ge.s32.totalorder %s286_s12, 1  ;;  %s286_s12 = sphi %s310_s12, %s13_s12  }
   0x2   : > { %p137_p1 = scmp.lt.s32.totalorder %s286_s12, 3 }
   0x4   : > { %p138_p2 = pnand %p260_p0, %p137_p1 }
   0x5   : > { %p161_p3 = scmp.lt.s32.totalorder (!%p138_p2), %s256_s13, 1 }
   0x6   : > { %141 = sbr.rel (%p138_p2) target bundleno = 146 (0x92), region = 32 }
   0xb   : > { %v172_v0 = vld [vmem:[%s333_s0] sm:$0x7]  ;;  %v288_v1 = vmov 0   ;;  %v289_v3 = vmov 839922192   ;;  %v180_v5 = vlaneseq  ;;  %s338_s13 = smov (!%p161_p3, %s256_s13), 1 }
   0xc   : > { %279 = vset.pattern.permute.xlu0 %v288_v1  ;;  %v186_v2 = vld [vmem:[%s334_s1] sm:$0x7]  ;;  %v178_v4 = vunpack.c.l.s4 %v289_v3  ;;  %s267_s18 = sshll.u32 %s338_s13, 3 }
   0xd   : > { %175 = vperm.xlu0 %279, %v172_v0   ;;  %v181_v7 = vshrl.u32 %v180_v5, 7  ;;  %s165_s21 = scalar_lea.vmem %s335_s2, %s267_s18  ;;  %s170_s24 = scalar_lea.vmem %s336_s3, %s267_s18 }
   0xe   : > { %v179_v6 = vunpack.c.0.s8 %v178_v4  ;;  %v171_v11 = vld [vmem:[%s165_s21] sm:$0x77] }
  0x10   : > { %v182_v8 = vsub.s32 %v179_v6, %v181_v7 }
  0x11   : > { %189 = vperm.xlu0 %279, %v186_v2  }
  0x88   : > { %v176_v9 = vpop.permute.xlu0 %175 }
  0x89   : > { %v183_v10 = vrot.slane %v176_v9, %v182_v8 }
  0x8b   : > { %v185_v13 = vsub.f32 %v171_v11, %v183_v10 }
  0x8c   : > { %v190_v12 = vpop.permute.xlu0 %189 }
  0x8d   : > { %v197_v14 = vrot.slane %v190_v12, %v182_v8 }
  0x8f   : > { %v199_v15 = vmul.f32 %v197_v14, %v185_v13 }
  0x91   : > { %200 = vst [vmem:[%s170_s24] sm:$0x77] %v199_v15 }
  0x92 PF: > { %s13_s12 = sadd.s32 1, %s286_s12  }
  0x93   : > { %p10_p4 = scmp.ge.s32.totalorder %s13_s12, 4  }
  0x95   :  { %12 = sbr.rel (!%p10_p4) target bundleno = 1 (0x1), region = 62 }

</bundles_post_ra>
